<compile_context>
chip_gen: v7x
topology: tpu7x:2x2x1
jax: 0.10.0
libtpu: 0.0.40
codegen_flags: <defaults>
</compile_context>

<pallas_src>
import functools

import jax
import jax.numpy as jnp
from jax import lax
from jax.experimental import pallas as pl
from jax.experimental.pallas import tpu as pltpu


# ------------------------------- helpers ------------------------------------

def _round_up(x, m):
    return ((x + m - 1) // m) * m


def _sublane(dtype):
    """Minimum sublane (second-minor) multiple for a dtype's packed tile."""
    return {4: 8, 2: 16, 1: 32}.get(jnp.dtype(dtype).itemsize, 8)


# Conservative soft budget for deciding batch-tile size (fits v7x's 64 MiB
# per-TC VMEM with headroom; v5e/v6e have 128 MiB).
_VMEM_SOFT_BUDGET = 48 * 1024 * 1024


@functools.lru_cache(maxsize=1)
def _single_buffering_supported():
    """Probe: does BlockSpec(pipeline_mode=pl.Buffered(1)) lower on this backend?"""
    try:
        def _copy(x_ref, o_ref):
            o_ref[...] = x_ref[...]

        spec = pl.BlockSpec((8, 128), lambda i: (0, 0),
                            pipeline_mode=pl.Buffered(1))
        out = pl.pallas_call(
            _copy,
            out_shape=jax.ShapeDtypeStruct((16, 128), jnp.float32),
            grid=(2,),
            in_specs=[spec],
            out_specs=pl.BlockSpec((8, 128), lambda i: (i, 0)),
        )(jnp.zeros((8, 128), jnp.float32))
        jax.block_until_ready(out)
        return True
    except Exception:
        return False


# ----------------------------- Pallas kernel --------------------------------

def _fused_mlp_kernel(*refs, n_layers, half_relu_dim, compute_dtype):
    """Fused MLP forward for one batch tile.

    refs = (x_ref, w0_ref, b0_ref, ..., w{L-1}_ref, b{L-1}_ref, o_ref)
    Feature dims are zero-padded to lane multiples; the batch tile is
    sublane-aligned.  Matmuls accumulate in f32; the bias is f32; hidden
    activations are re-cast to `compute_dtype` between MXU passes.
    """
    x_ref = refs[0]
    o_ref = refs[-1]

    h = x_ref[...].astype(compute_dtype)
    for i in range(n_layers):
        w = refs[1 + 2 * i][...]          # (Kp, Np), padded, compute_dtype
        b = refs[2 + 2 * i][...]          # (1, Np), padded, float32
        acc = jnp.dot(h, w, preferred_element_type=jnp.float32) + b
        if i < n_layers - 1:
            # Hidden layer: ReLU, requantize for the next MXU pass.
            h = jnp.maximum(acc, 0.0).astype(compute_dtype)
        else:
            # Last layer: optional half-ReLU fused as a column mask.
            if half_relu_dim is not None:
                col = lax.broadcasted_iota(jnp.int32, acc.shape, 1)
                acc = jnp.where(col < half_relu_dim, jnp.maximum(acc, 0.0), acc)
            o_ref[...] = acc.astype(o_ref.dtype)


# ------------------------------ JAX wrapper ----------------------------------

def fused_mlp_forward(x, weights, biases, *, half_relu_dim, compute_dtype,
                      out_dtype):
    """Run the fused MLP kernel on a (B, K) input.

    weights[i]: padded (Kp_i, Np_i) arrays in compute_dtype (zero-padded)
    biases[i]:  padded (1, Np_i) float32 arrays
    Returns the padded output (Bp, NLp); caller slices to (B, N_last).
    """
    B, K = x.shape
    n_layers = len(weights)
    K0p = weights[0].shape[0]
    NLp = weights[-1].shape[1]
    max_np = max(w.shape[1] for w in weights)

    x_item = jnp.dtype(x.dtype).itemsize
    out_item = jnp.dtype(out_dtype).itemsize

    # Sublane alignment for the batch axis (16 for bf16 tiles, 8 for f32).
    sub = max(_sublane(x.dtype), _sublane(out_dtype), _sublane(compute_dtype))
    Bp_min = _round_up(max(B, 1), sub)

    weight_bytes = sum(int(w.size) * w.dtype.itemsize for w in weights)
    bias_bytes = sum(int(b.size) * b.dtype.itemsize for b in biases)

    # Batch tile: as large as the VMEM left after (single-buffered) weights
    # allows, capped at 512 rows to bound activation residency.
    per_row_io = K0p * x_item + NLp * out_item     # pipelined in/out tiles
    per_row_act = max_np * 4                       # f32 accumulator headroom
    avail = max(_VMEM_SOFT_BUDGET - (weight_bytes + bias_bytes), 1 << 20)
    tm_vmem = max(sub, avail // max(2 * per_row_io + 2 * per_row_act, 1))

    tm = min(Bp_min, 512, tm_vmem)
    tm = max(sub, (tm // sub) * sub)
    # Megacore (v7x has 2 TCs): split a large single-tile batch into >=2 grid
    # steps; per-step overhead (~0.35us) is negligible at >=128 rows per tile.
    if Bp_min <= tm and Bp_min >= 256:
        tm = _round_up((Bp_min + 1) // 2, sub)
    Bp = _round_up(Bp_min, tm)

    # Only materialize a padded copy of x when padding is actually required;
    # dtype cast (if any) happens inside the kernel, not as a separate XLA op.
    if (K != K0p) or (B != Bp):
        x_p = jnp.zeros((Bp, K0p), x.dtype).at[:B, :K].set(x)
    else:
        x_p = x

    # Weights/biases: constant index_map -> VMEM-resident across batch tiles.
    # Single-buffer them (default double-buffering would 2x their residency).
    wb_kwargs = ({"pipeline_mode": pl.Buffered(1)}
                 if _single_buffering_supported() else {})
    n_wb_buffers = 1 if wb_kwargs else 2

    in_specs = [pl.BlockSpec((tm, K0p), lambda i: (i, 0))]
    args = [x_p]
    for w, b in zip(weights, biases):
        in_specs.append(pl.BlockSpec(w.shape, lambda i: (0, 0), **wb_kwargs))
        in_specs.append(pl.BlockSpec(b.shape, lambda i: (0, 0), **wb_kwargs))
        args.extend([w, b])

    # Explicit scoped-VMEM limit: weights (x buffer count) + double-buffered
    # in/out tiles + f32 accumulator headroom + slack.
    vmem_bytes = (n_wb_buffers * (weight_bytes + bias_bytes)
                  + 2 * tm * per_row_io
                  + 4 * tm * per_row_act
                  + (2 << 20))
    vmem_bytes = int(min(max(vmem_bytes, 32 << 20), 96 << 20))

    flops = 2 * Bp * sum(w.shape[0] * w.shape[1] for w in weights)
    bytes_accessed = (int(x_p.size) * x_item + weight_bytes + bias_bytes
                      + Bp * NLp * out_item)

    y_p = pl.pallas_call(
        functools.partial(_fused_mlp_kernel,
                          n_layers=n_layers,
                          half_relu_dim=half_relu_dim,
                          compute_dtype=compute_dtype),
        out_shape=jax.ShapeDtypeStruct((Bp, NLp), out_dtype),
        grid=(Bp // tm,),
        in_specs=in_specs,
        out_specs=pl.BlockSpec((tm, NLp), lambda i: (i, 0)),
        compiler_params=pltpu.CompilerParams(
            dimension_semantics=("parallel",),
            vmem_limit_bytes=vmem_bytes),
        cost_estimate=pl.CostEstimate(flops=flops, transcendentals=0,
                                      bytes_accessed=bytes_accessed),
    )(*args)
    return y_p


# --------------------------------- module ------------------------------------

class MLP:
    """JAX/Pallas port of the PyTorch MLP module (fused single-kernel forward).

    Builds Linear->ReLU->...->Linear (last ReLU dropped, like the PyTorch code
    which slices off the trailing ReLU).  `batch_norm` is accepted for
    signature parity but — as in the reference — never adds a BatchNorm layer.

    compute_dtype defaults to bfloat16: bf16 operands are MXU-native on
    v5e/v6e/v7x and halve weight DMA/VMEM; accumulation and bias are f32.
    feature_align=128 by default; pass 256 on v6e/v7x for layers >=256 wide
    to fill the 2x256x256 MXU.
    """

    def __init__(self, sizes, batch_norm=True, last_layer_act='linear',
                 key=None, compute_dtype=jnp.bfloat16, feature_align=128):
        if last_layer_act not in ('linear', 'ReLU'):
            raise ValueError("last_layer_act must be one of 'linear' or 'ReLU'")
        self.activation = last_layer_act
        self.sizes = list(sizes)
        self.compute_dtype = jnp.dtype(compute_dtype)
        feature_align = max(int(feature_align), 128)
        if key is None:
            key = jax.random.PRNGKey(0)

        self.params = []         # unpadded f32 params (reference / export)
        self._packed = []        # padded (w, b) for the kernel
        for s in range(len(sizes) - 1):
            key, kw, kb = jax.random.split(key, 3)
            fan_in, fan_out = sizes[s], sizes[s + 1]
            bound = 1.0 / jnp.sqrt(jnp.float32(fan_in))
            # PyTorch nn.Linear default init: U(-1/sqrt(fan_in), 1/sqrt(fan_in)).
            # Stored as (in, out) so the kernel computes y = x @ W + b directly.
            w = jax.random.uniform(kw, (fan_in, fan_out), jnp.float32,
                                   -bound, bound)
            b = jax.random.uniform(kb, (fan_out,), jnp.float32, -bound, bound)
            self.params.append((w, b))

            # Pre-pack once: pad both dims (lane-dense, full MXU tiles).
            # Weights in compute_dtype; bias kept in f32 (added post-matmul).
            kp = _round_up(fan_in, feature_align)
            np_ = _round_up(fan_out, feature_align)
            w_pad = jnp.zeros((kp, np_), self.compute_dtype
                              ).at[:fan_in, :fan_out].set(
                                  w.astype(self.compute_dtype))
            b_pad = jnp.zeros((1, np_), jnp.float32).at[0, :fan_out].set(b)
            self._packed.append((w_pad, b_pad))

    def __call__(self, x):
        B = x.shape[0]
        n_out = self.sizes[-1]
        half_dim = (n_out // 2) if self.activation == 'ReLU' else None
        weights = [w for w, _ in self._packed]
        biases = [b for _, b in self._packed]
        y_p = fused_mlp_forward(x, weights, biases,
                                half_relu_dim=half_dim,
                                compute_dtype=self.compute_dtype,
                                out_dtype=jnp.dtype(x.dtype))
        if y_p.shape == (B, n_out):
            return y_p
        return y_p[:B, :n_out]


# -------------------------------- reference -----------------------------------

def mlp_reference(params, x, activation, compute_dtype=jnp.float32):
    """Pure-JAX reference matching the kernel's casting behavior (f32 bias)."""
    n = len(params)
    h = x.astype(compute_dtype)
    for i, (w, b) in enumerate(params):
        acc = jnp.dot(h, w.astype(compute_dtype),
                      preferred_element_type=jnp.float32)
        acc = acc + b.astype(jnp.float32)
        if i < n - 1:
            h = jnp.maximum(acc, 0.0).astype(compute_dtype)
        else:
            h = acc
    out = h
    if activation == 'ReLU':
        dim = out.shape[1] // 2
        out = jnp.concatenate(
            [jnp.maximum(out[:, :dim], 0.0), out[:, dim:]], axis=1)
    return out.astype(x.dtype)


# ----------------------------------- main -------------------------------------

if __name__ == "__main__":
    key = jax.random.PRNGKey(0)
    kx, kp = jax.random.split(key)

    batch = 8
    sizes = [32, 64, 48, 16]
    x = jax.random.normal(kx, (batch, sizes[0]), jnp.float32)

    # f32 compute, last_layer_act='linear'
    mlp_lin = MLP(sizes, batch_norm=True, last_layer_act='linear', key=kp,
                  compute_dtype=jnp.float32)
    y_lin = jax.block_until_ready(mlp_lin(x))
    y_lin_ref = mlp_reference(mlp_lin.params, x, 'linear')
    assert y_lin.shape == (batch, sizes[-1])
    assert jnp.allclose(y_lin, y_lin_ref, atol=1e-5, rtol=1e-5)

    # f32 compute, last_layer_act='ReLU' (half-ReLU + concat, fused in-kernel)
    mlp_relu = MLP(sizes, batch_norm=True, last_layer_act='ReLU', key=kp,
                   compute_dtype=jnp.float32)
    y_relu = jax.block_until_ready(mlp_relu(x))
    y_relu_ref = mlp_reference(mlp_relu.params, x, 'ReLU')
    assert y_relu.shape == (batch, sizes[-1])
    assert jnp.allclose(y_relu, y_relu_ref, atol=1e-5, rtol=1e-5)

    # default bf16 compute path (bf16 operands, f32 accumulation, f32 bias)
    mlp_bf16 = MLP(sizes, batch_norm=True, last_layer_act='ReLU', key=kp)
    y_bf16 = jax.block_until_ready(mlp_bf16(x))
    y_bf16_ref = mlp_reference(mlp_bf16.params, x, 'ReLU',
                               compute_dtype=jnp.bfloat16)
    assert y_bf16.shape == (batch, sizes[-1])
    assert jnp.allclose(y_bf16, y_bf16_ref, atol=2e-2, rtol=2e-2)

    # Larger batch: exercises batch padding + >=2 grid steps (megacore split).
    big_batch = 260
    xb = jax.random.normal(kx, (big_batch, sizes[0]), jnp.float32)
    y_big = jax.block_until_ready(mlp_relu(xb))
    y_big_ref = mlp_reference(mlp_relu.params, xb, 'ReLU')
    assert y_big.shape == (big_batch, sizes[-1])
    assert jnp.allclose(y_big, y_big_ref, atol=1e-5, rtol=1e-5)

    print("KERNEL_OK")
</pallas_src>

<mosaic_0001>
module attributes {stable_mosaic.version = 11 : i64} {
  func.func @_copy(%arg0: i32, %arg1: memref<8x128xf32, #tpu.memory_space<vmem>>, %arg2: memref<8x128xf32, #tpu.memory_space<vmem>>) attributes {dimension_semantics = [#tpu.dimension_semantics<arbitrary>], iteration_bounds = array<i64: 2>, scalar_prefetch = 0 : i64, scratch_operands = 0 : i64, tpu.core_type = #tpu.core_type<tc>, window_params = [{pipeline_mode = #tpu.pipeline_mode<synchronous>, transform_indices = @transform_0, window_bounds = array<i64: 8, 128>}, {transform_indices = @transform_1, window_bounds = array<i64: 8, 128>}]} {
    %c0 = arith.constant 0 : index
    %c0_0 = arith.constant 0 : index
    %0 = vector.load %arg1[%c0, %c0_0] : memref<8x128xf32, #tpu.memory_space<vmem>>, vector<8x128xf32>
    %c0_1 = arith.constant 0 : index
    %c0_2 = arith.constant 0 : index
    %1 = vector.load %arg2[%c0_1, %c0_2] : memref<8x128xf32, #tpu.memory_space<vmem>>, vector<8x128xf32>
    tpu.vector_store %arg2[%c0_1, %c0_2], %0 {strides = array<i32>} : memref<8x128xf32, #tpu.memory_space<vmem>>, vector<8x128xf32>,
    return
  }
  func.func @transform_0(%arg0: i32) -> (i32, i32) {
    %c0_i32 = arith.constant 0 : i32
    %c0_i32_0 = arith.constant 0 : i32
    %c0_i32_1 = arith.constant 0 : i32
    return %c0_i32, %c0_i32_0 : i32, i32
  }
  func.func @transform_1(%arg0: i32) -> (i32, i32) {
    %c0_i32 = arith.constant 0 : i32
    %c0_i32_0 = arith.constant 0 : i32
    return %arg0, %c0_i32 : i32, i32
  }
}

module attributes {stable_mosaic.version = 11 : i64} {
  func.func @_fused_mlp_kernel(%arg0: i32, %arg1: memref<8x128xf32, #tpu.memory_space<vmem>>, %arg2: memref<128x128xf32, #tpu.memory_space<vmem>>, %arg3: memref<1x128xf32, #tpu.memory_space<vmem>>, %arg4: memref<128x128xf32, #tpu.memory_space<vmem>>, %arg5: memref<1x128xf32, #tpu.memory_space<vmem>>, %arg6: memref<128x128xf32, #tpu.memory_space<vmem>>, %arg7: memref<1x128xf32, #tpu.memory_space<vmem>>, %arg8: memref<8x128xf32, #tpu.memory_space<vmem>>) attributes {dimension_semantics = [#tpu.dimension_semantics<parallel>], iteration_bounds = array<i64: 1>, scalar_prefetch = 0 : i64, scratch_operands = 0 : i64, tpu.core_type = #tpu.core_type<tc>, window_params = [{transform_indices = @transform_0, window_bounds = array<i64: 8, 128>}, {pipeline_mode = #tpu.pipeline_mode<synchronous>, transform_indices = @transform_1, window_bounds = array<i64: 128, 128>}, {pipeline_mode = #tpu.pipeline_mode<synchronous>, transform_indices = @transform_2, window_bounds = array<i64: 1, 128>}, {pipeline_mode = #tpu.pipeline_mode<synchronous>, transform_indices = @transform_3, window_bounds = array<i64: 128, 128>}, {pipeline_mode = #tpu.pipeline_mode<synchronous>, transform_indices = @transform_4, window_bounds = array<i64: 1, 128>}, {pipeline_mode = #tpu.pipeline_mode<synchronous>, transform_indices = @transform_5, window_bounds = array<i64: 128, 128>}, {pipeline_mode = #tpu.pipeline_mode<synchronous>, transform_indices = @transform_6, window_bounds = array<i64: 1, 128>}, {transform_indices = @transform_7, window_bounds = array<i64: 8, 128>}]} {
    %c0 = arith.constant 0 : index
    %c0_0 = arith.constant 0 : index
    %0 = vector.load %arg1[%c0, %c0_0] : memref<8x128xf32, #tpu.memory_space<vmem>>, vector<8x128xf32>
    %c0_1 = arith.constant 0 : index
    %c0_2 = arith.constant 0 : index
    %1 = vector.load %arg2[%c0_1, %c0_2] : memref<128x128xf32, #tpu.memory_space<vmem>>, vector<128x128xf32>
    %c0_3 = arith.constant 0 : index
    %c0_4 = arith.constant 0 : index
    %2 = vector.load %arg3[%c0_3, %c0_4] : memref<1x128xf32, #tpu.memory_space<vmem>>, vector<1x128xf32>
    %cst = arith.constant dense<0.000000e+00> : vector<8x128xf32>
    %3 = tpu.matmul %0, %1, %cst {dimension_numbers = #tpu.dot_dimension_numbers<[1], [0], [0], [1], [0, 0, 1, 1], [], []>} : vector<8x128xf32>, vector<128x128xf32>, vector<8x128xf32> -> vector<8x128xf32>
    %4 = vector.broadcast %2 : vector<1x128xf32> to vector<8x128xf32>
    %5 = arith.addf %3, %4 : vector<8x128xf32>
    %cst_5 = arith.constant 0.000000e+00 : f32
    %6 = vector.broadcast %cst_5 : f32 to vector<8x128xf32>
    %7 = arith.maximumf %5, %6 : vector<8x128xf32>
    %c0_6 = arith.constant 0 : index
    %c0_7 = arith.constant 0 : index
    %8 = vector.load %arg4[%c0_6, %c0_7] : memref<128x128xf32, #tpu.memory_space<vmem>>, vector<128x128xf32>
    %c0_8 = arith.constant 0 : index
    %c0_9 = arith.constant 0 : index
    %9 = vector.load %arg5[%c0_8, %c0_9] : memref<1x128xf32, #tpu.memory_space<vmem>>, vector<1x128xf32>
    %cst_10 = arith.constant dense<0.000000e+00> : vector<8x128xf32>
    %10 = tpu.matmul %7, %8, %cst_10 {dimension_numbers = #tpu.dot_dimension_numbers<[1], [0], [0], [1], [0, 0, 1, 1], [], []>} : vector<8x128xf32>, vector<128x128xf32>, vector<8x128xf32> -> vector<8x128xf32>
    %11 = vector.broadcast %9 : vector<1x128xf32> to vector<8x128xf32>
    %12 = arith.addf %10, %11 : vector<8x128xf32>
    %cst_11 = arith.constant 0.000000e+00 : f32
    %13 = vector.broadcast %cst_11 : f32 to vector<8x128xf32>
    %14 = arith.maximumf %12, %13 : vector<8x128xf32>
    %c0_12 = arith.constant 0 : index
    %c0_13 = arith.constant 0 : index
    %15 = vector.load %arg6[%c0_12, %c0_13] : memref<128x128xf32, #tpu.memory_space<vmem>>, vector<128x128xf32>
    %c0_14 = arith.constant 0 : index
    %c0_15 = arith.constant 0 : index
    %16 = vector.load %arg7[%c0_14, %c0_15] : memref<1x128xf32, #tpu.memory_space<vmem>>, vector<1x128xf32>
    %cst_16 = arith.constant dense<0.000000e+00> : vector<8x128xf32>
    %17 = tpu.matmul %14, %15, %cst_16 {dimension_numbers = #tpu.dot_dimension_numbers<[1], [0], [0], [1], [0, 0, 1, 1], [], []>} : vector<8x128xf32>, vector<128x128xf32>, vector<8x128xf32> -> vector<8x128xf32>
    %18 = vector.broadcast %16 : vector<1x128xf32> to vector<8x128xf32>
    %19 = arith.addf %17, %18 : vector<8x128xf32>
    %c0_17 = arith.constant 0 : index
    %c0_18 = arith.constant 0 : index
    %20 = vector.load %arg8[%c0_17, %c0_18] : memref<8x128xf32, #tpu.memory_space<vmem>>, vector<8x128xf32>
    tpu.vector_store %arg8[%c0_17, %c0_18], %19 {strides = array<i32>} : memref<8x128xf32, #tpu.memory_space<vmem>>, vector<8x128xf32>,
    return
  }
  func.func @transform_0(%arg0: i32) -> (i32, i32) {
    %c0_i32 = arith.constant 0 : i32
    %c0_i32_0 = arith.constant 0 : i32
    return %arg0, %c0_i32 : i32, i32
  }
  func.func @transform_1(%arg0: i32) -> (i32, i32) {
    %c0_i32 = arith.constant 0 : i32
    %c0_i32_0 = arith.constant 0 : i32
    %c0_i32_1 = arith.constant 0 : i32
    return %c0_i32, %c0_i32_0 : i32, i32
  }
  func.func @transform_2(%arg0: i32) -> (i32, i32) {
    %c0_i32 = arith.constant 0 : i32
    %c0_i32_0 = arith.constant 0 : i32
    %c0_i32_1 = arith.constant 0 : i32
    return %c0_i32, %c0_i32_0 : i32, i32
  }
  func.func @transform_3(%arg0: i32) -> (i32, i32) {
    %c0_i32 = arith.constant 0 : i32
    %c0_i32_0 = arith.constant 0 : i32
    %c0_i32_1 = arith.constant 0 : i32
    return %c0_i32, %c0_i32_0 : i32, i32
  }
  func.func @transform_4(%arg0: i32) -> (i32, i32) {
    %c0_i32 = arith.constant 0 : i32
    %c0_i32_0 = arith.constant 0 : i32
    %c0_i32_1 = arith.constant 0 : i32
    return %c0_i32, %c0_i32_0 : i32, i32
  }
  func.func @transform_5(%arg0: i32) -> (i32, i32) {
    %c0_i32 = arith.constant 0 : i32
    %c0_i32_0 = arith.constant 0 : i32
    %c0_i32_1 = arith.constant 0 : i32
    return %c0_i32, %c0_i32_0 : i32, i32
  }
  func.func @transform_6(%arg0: i32) -> (i32, i32) {
    %c0_i32 = arith.constant 0 : i32
    %c0_i32_0 = arith.constant 0 : i32
    %c0_i32_1 = arith.constant 0 : i32
    return %c0_i32, %c0_i32_0 : i32, i32
  }
  func.func @transform_7(%arg0: i32) -> (i32, i32) {
    %c0_i32 = arith.constant 0 : i32
    %c0_i32_0 = arith.constant 0 : i32
    return %arg0, %c0_i32 : i32, i32
  }
}

</mosaic_0001>

<bundles_post_ra>
// kernel: tpu_custom_call.1
= control target key start
LH: loop header
LB: loop body
LE: loop exit
PB: predicated region body
PF: predicated region fallthrough
CT: control target
= control target key end

     0   :  { %6 = vsyncpa [#allocation3], 0  ;;  %s481_s0 = inlined_call_operand.hbm [shape: f32[8,128], index: 0, kind: input, shape index: {}]   ;;  %s482_s1 = inlined_call_operand.hbm [shape: f32[16,128], index: 1, kind: output, shape index: {}]  }
   0x1   :  { %7 = vsyncpa [#allocation4], 0 }
   0x2   :  { %9 = vsyncpa [#allocation4 + $0x1], 0  ;;  %s351_s6 = smov 0   ;;  %s353_s7 = smov 0  }
   0x3   :  { %s355_s8 = smov 0   ;;  %s357_s9 = smov 0  }
   0x4 LB: > { %s372_s10 = sadd.s32 4294967295, %s337_s9   ;;  %s183_s11 = sadd.s32 4294967294, %s337_s9   ;;  %s337_s9 = sphi %s357_s9, %s498_s9   ;;  %s333_s8 = sphi %s355_s8, %s497_s8   ;;  %s329_s7 = sphi %s353_s7, %s496_s7   ;;  %s325_s6 = sphi %s351_s6, %s495_s6  }
   0x5   : > { %s376_s12 = sadd.s32 1, %s337_s9   ;;  %s43_s13 = sadd.s32 1, %s333_s8 }
   0x6   : > { %s40_s14 = ssub.s32 %s337_s9, %s376_s12  ;;  %p53_p0 = scmp.ne.s32.totalorder %s333_s8, %s329_s7 }
   0x7   : > { %p41_p1 = scmp.eq.s32.totalorder %s40_s14, 0  ;;  %p54_p2 = scmp.eq.s32.totalorder %s372_s10, 1 }
   0x8   : > { %p59_p3 = scmp.ne.s32.totalorder %s329_s7, %s325_s6  ;;  %p60_p4 = scmp.eq.s32.totalorder %s183_s11, 1 }
   0x9   : > { %s387_s15 = scalar_select %p41_p1, %s333_s8, %s43_s13  }
   0xa   : > { %p389_p5 = por %p54_p2, %p53_p0  ;;  %p393_p6 = por %p60_p4, %p59_p3 }
   0xb   : > { %p184_p7 = scmp.ge.s32.totalorder %s337_s9, 1  ;;  %p67_p8 = scmp.lt.s32.totalorder %s337_s9, 3 }
   0xc   : > { %s486_s16 = scalar_select %p389_p5, 1, 0 }
   0xd   : > { %s487_s17 = scalar_select %p393_p6, 1, 0 }
   0xe   : > { %p483_p9 = scmp.eq.s32.totalorder %s372_s10, 0  ;;  %p400_p10 = pnand %p184_p7, %p67_p8 }
   0xf   : > { %s339_s19 = smov [#allocation2]   ;;  %s243_s24 = scalar_lea.hbm %s481_s0, 128 }
  0x10   : > { %s488_s18 = scalar_select %p400_p10, 1, 0 }
  0x11   : > { %s80_s20 = sshll.u32 %s339_s19, 4  ;;  %p199_p11 = pneg %p400_p10  ;;  %s81_s20 = int_to_ptr.vmem [resolvable:$true] %s80_s20 }
  0x12   : > { %p244_p13 = scmp.ne.s32.totalorder %s481_s0, %s243_s24  ;;  %p250_p3 = scmp.lt.u32.totalorder %s243_s24, %s481_s0 }
  0x13   : > { %p408_p12 = pnand %p483_p9, %p199_p11 }
  0x15   : > { %p245_p0 = pneg %p408_p12 }
  0x17   : > { %p246_p1 = pnand %p245_p0, %p244_p13 }
  0x19   : > { %p247_p2 = pneg %p246_p1 }
  0x1b   : > { %p252_p4 = pnand %p250_p3, %p247_p2 }
  0x1d   : > { %255 = shalt.err (!%p252_p4)
}
  0x1e   : > { %s256_s29 = scalar_lea.vmem %s81_s20, 128  ;;  %p264_p9 = scmp.lt.s32.totalorder %s81_s20, %s81_s20 }
  0x1f   : > { %p257_p7 = scmp.ne.s32.totalorder %s81_s20, %s256_s29  ;;  %p265_p6 = scmp.lt.s32.totalorder %s256_s29, %s256_s29 }
  0x21   : > { %p259_p8 = pnand %p257_p7, %p245_p0  ;;  %p266_p5 = por %p265_p6, %p264_p9 }
  0x23   : > { %p260_p11 = pneg %p259_p8 }
  0x25   : > { %p267_p10 = pnand %p266_p5, %p260_p11 }
  0x27   : > { %270 = shalt.err (!%p267_p10)
}
  0x28   : > { %202 = dma.hbm_to_vmem [thread:$0]  (!%p408_p12), %s481_s0, 128, %s81_s20, [#allocation3]  }
  0x29   : > { %p490_p13 = scmp.ne.s32.totalorder %s488_s18, 0 }
  0x2a   : > { %p491_p1 = scmp.eq.s32.totalorder (!%p490_p13), %s372_s10, 0 }
  0x2b   : > { %93 = sbr.rel (%p490_p13) target bundleno = 77 (0x4d), region = 24 }
  0x32   : > { %316 = dma.done.wait (%p491_p1), [#allocation3], 128   ;;  %p492_p0 = pmov %p491_p1 }
  0x33   : > { %s105_s3 = sand.u32 1, %s329_s7   ;;  %s190_s13 = sshll.u32 %s372_s10, 7  ;;  %v108_v0 = vld [vmem:[#allocation2] sm:$0xff] }
  0x34   : > { %318 = vsyncadd (%p492_p0), [#allocation3], 4294967168  ;;  %s188_s4 = sshll.u32 %s105_s3, 3  ;;  %s441_s18 = scalar_lea.hbm %s482_s1, %s190_s13 }
  0x35   : > { %s107_s5 = scalar_lea.vmem [#allocation5], %s188_s4  ;;  %s111_s20 = scalar_lea.sflag [#allocation4], %s105_s3 }
  0x36   : > { %s124_s11 = sshll.u32 %s107_s5, 4  ;;  %109 = vst [vmem:[%s107_s5] sm:$0xff] %v108_v0  ;;  %p493_p6 = scmp.ne.s32.totalorder %s486_s16, 0  ;;  %s436_s11 = int_to_ptr.vmem [resolvable:$true] %s124_s11 }
  0x37   : > { %s271_s21 = scalar_lea.vmem %s436_s11, 128  ;;  %s340_s22 = smov [#allocation5]  }
  0x38   : > { %p272_p5 = scmp.ne.s32.totalorder %s436_s11, %s271_s21  ;;  %s275_s10 = sshll.u32 %s340_s22, 4  ;;  %s276_s10 = int_to_ptr.vmem [resolvable:$false] %s275_s10 }
  0x39   : > { %s277_s23 = scalar_lea.vmem %s276_s10, 256  ;;  %p278_p12 = scmp.lt.s32.totalorder %s436_s11, %s276_s10 }
  0x3a   : > { %p273_p9 = pnand %p272_p5, %p493_p6  ;;  %p279_p2 = scmp.lt.s32.totalorder %s277_s23, %s271_s21 }
  0x3c   : > { %p274_p10 = pneg %p273_p9  ;;  %p280_p3 = por %p279_p2, %p278_p12 }
  0x3e   : > { %p281_p4 = pnand %p280_p3, %p274_p10 }
  0x40   : > { %284 = shalt.err (!%p281_p4)
}
  0x41   : > { %s285_s24 = scalar_lea.hbm %s441_s18, 128  ;;  %s289_s27 = scalar_lea.hbm %s482_s1, 256 }
  0x42   : > { %p286_p7 = scmp.ne.s32.totalorder %s441_s18, %s285_s24  ;;  %p290_p13 = scmp.lt.u32.totalorder %s441_s18, %s482_s1 }
  0x43   : > { %p291_p1 = scmp.lt.u32.totalorder %s289_s27, %s285_s24  ;;  %p293_p5 = scmp.lt.u32.totalorder %s285_s24, %s441_s18 }
  0x44   : > { %p287_p8 = pnand %p286_p7, %p493_p6 }
  0x45   : > { %p292_p0 = por %p291_p1, %p290_p13 }
  0x46   : > { %p288_p11 = pneg %p287_p8 }
  0x47   : > { %p294_p9 = por %p293_p5, %p292_p0 }
  0x49   : > { %p295_p10 = pnand %p294_p9, %p288_p11 }
  0x4b   : > { %298 = shalt.err (!%p295_p10)
}
  0x4c   : > { %197 = dma.vmem_to_hbm [thread:$0]  (%p493_p6), %s436_s11, 128, %s441_s18, %s111_s20  }
  0x4d PF: > { %p209_p12 = scmp.ge.s32.totalorder %s337_s9, 2  ;;  %s136_s30 = sand.u32 1, %s325_s6  }
  0x4e   : > { %p494_p2 = scmp.ne.s32.totalorder %s487_s17, 0  ;;  %s137_s2 = scalar_lea.sflag [#allocation4], %s136_s30 }
  0x50   : > { %p204_p3 = pnand %p209_p12, %p494_p2 }
  0x52   : > { %320 = dma.done.wait (!%p204_p3), %s137_s2, 128  }
  0x53   : > { %322 = vsyncadd (!%p204_p3), %s137_s2, 4294967168  ;;  %p12_p4 = scmp.ge.s32.totalorder %s376_s12, 4   ;;  %s495_s6 = smov %s329_s7 }
  0x54   : > { %s496_s7 = smov %s333_s8  ;;  %s497_s8 = smov %s387_s15 }
  0x55   : > { %s498_s9 = smov %s376_s12  ;;  %14 = sbr.rel (!%p12_p4) target bundleno = 4 (0x4), region = 61 }
  0x5c   :  { %142 = vsyncpa [#allocation3], 1 }
  0x5d   :  { %144 = vsyncpa [#allocation3 + $0x1], 1 }
  0x5e   :  { %145 = vsyncpa [#allocation4], 1 }
  0x5f   :  { %147 = vsyncpa [#allocation4 + $0x1], 1 }

// kernel: tpu_custom_call.1
= control target key start
LH: loop header
LB: loop body
LE: loop exit
PB: predicated region body
PF: predicated region fallthrough
CT: control target
= control target key end

     0   :  { %12 = vsyncpa [#allocation3], 0  ;;  %s897_s0 = inlined_call_operand.hbm [shape: f32[8,128], index: 0, kind: input, shape index: {}]   ;;  %s898_s1 = inlined_call_operand.hbm [shape: f32[128,128], index: 1, kind: input, shape index: {}]   ;;  %s899_s2 = inlined_call_operand.vmem [shape: f32[1,128], index: 2, kind: input, shape index: {}]   ;;  %s900_s3 = inlined_call_operand.hbm [shape: f32[128,128], index: 3, kind: input, shape index: {}]   ;;  %s901_s4 = inlined_call_operand.vmem [shape: f32[1,128], index: 4, kind: input, shape index: {}]   ;;  %s902_s5 = inlined_call_operand.hbm [shape: f32[128,128], index: 5, kind: input, shape index: {}]   ;;  %s903_s6 = inlined_call_operand.vmem [shape: f32[1,128], index: 6, kind: input, shape index: {}]   ;;  %s904_s7 = inlined_call_operand.hbm [shape: f32[8,128], index: 7, kind: output, shape index: {}]  }
   0x1   :  { %13 = vsyncpa [#allocation6], 0 }
   0x2   :  { %14 = vsyncpa [#allocation9], 0 }
   0x3   :  { %15 = vsyncpa [#allocation4], 0  ;;  %s739_s24 = smov [#allocation5]   ;;  %s621_s28 = scalar_lea.hbm %s898_s1, 2048 }
   0x4   :  { %s31_s25 = sshll.u32 %s739_s24, 4  ;;  %p622_p0 = scmp.ne.s32.totalorder %s898_s1, %s621_s28  ;;  %s32_s25 = int_to_ptr.vmem [resolvable:$true] %s31_s25 }
   0x5   :  { %p625_p1 = scmp.lt.u32.totalorder %s621_s28, %s898_s1 }
   0x7   :  { %p627_p2 = pnand %p625_p1, %p622_p0 }
   0x9   :  { %630 = shalt.err (!%p627_p2)
}
   0xa   :  { %s631_s10 = scalar_lea.vmem %s32_s25, 2048  ;;  %p636_p4 = scmp.lt.s32.totalorder %s32_s25, %s32_s25 }
   0xb   :  { %p632_p3 = scmp.ne.s32.totalorder %s32_s25, %s631_s10  ;;  %p637_p5 = scmp.lt.s32.totalorder %s631_s10, %s631_s10 }
   0xd   :  { %p638_p6 = por %p637_p5, %p636_p4 }
   0xf   :  { %p639_p7 = pnand %p638_p6, %p632_p3 }
  0x11   :  { %642 = shalt.err (!%p639_p7)
}
  0x12   :  { %s740_s11 = smov 128   ;;  %s741_s12 = smov 8  }
  0x13   :  { %37 = dma.hbm_to_vmem [thread:$0]  %s898_s1, 2048, %s32_s25, [#allocation6], %s740_s11, %s740_s11, %s741_s12  }
  0x14   :  { %s742_s15 = smov [#allocation2]   ;;  %s743_s17 = smov [#allocation7]  }
  0x15   :  { %s22_s16 = sshll.u32 %s742_s15, 4  ;;  %s45_s18 = sshll.u32 %s743_s17, 4  ;;  %s23_s16 = int_to_ptr.vmem [resolvable:$true] %s22_s16  ;;  %s46_s18 = int_to_ptr.vmem [resolvable:$true] %s45_s18 }
  0x16   :  { %s643_s21 = scalar_lea.hbm %s897_s0, 128 }
  0x17   :  { %p644_p8 = scmp.ne.s32.totalorder %s897_s0, %s643_s21  ;;  %p647_p9 = scmp.lt.u32.totalorder %s643_s21, %s897_s0 }
  0x19   :  { %p649_p10 = pnand %p647_p9, %p644_p8 }
  0x1b   :  { %652 = shalt.err (!%p649_p10)
}
  0x1c   :  { %s653_s1 = scalar_lea.vmem %s23_s16, 128  ;;  %p658_p12 = scmp.lt.s32.totalorder %s23_s16, %s23_s16 }
  0x1d   :  { %p654_p11 = scmp.ne.s32.totalorder %s23_s16, %s653_s1  ;;  %p659_p13 = scmp.lt.s32.totalorder %s653_s1, %s653_s1 }
  0x1f   :  { %p660_p0 = por %p659_p13, %p658_p12 }
  0x21   :  { %p661_p1 = pnand %p660_p0, %p654_p11 }
  0x23   :  { %664 = shalt.err (!%p661_p1)
}
  0x24   :  { %25 = dma.hbm_to_vmem [thread:$0]  %s897_s0, 128, %s23_s16, [#allocation3]  }
  0x25   :  { %s665_s30 = scalar_lea.hbm %s900_s3, 2048 }
  0x26   :  { %p666_p2 = scmp.ne.s32.totalorder %s900_s3, %s665_s30  ;;  %p669_p3 = scmp.lt.u32.totalorder %s665_s30, %s900_s3 }
  0x28   :  { %p671_p4 = pnand %p669_p3, %p666_p2 }
  0x2a   :  { %674 = shalt.err (!%p671_p4)
}
  0x2b   :  { %s675_s14 = scalar_lea.vmem %s46_s18, 2048  ;;  %p680_p6 = scmp.lt.s32.totalorder %s46_s18, %s46_s18 }
  0x2c   :  { %p676_p5 = scmp.ne.s32.totalorder %s46_s18, %s675_s14  ;;  %p681_p7 = scmp.lt.s32.totalorder %s675_s14, %s675_s14 }
  0x2e   :  { %p682_p8 = por %p681_p7, %p680_p6 }
  0x30   :  { %p683_p9 = pnand %p682_p8, %p676_p5 }
  0x32   :  { %686 = shalt.err (!%p683_p9)
}
  0x33   :  { %51 = dma.hbm_to_vmem [thread:$0]  %s900_s3, 2048, %s46_s18, [#allocation6], %s740_s11, %s740_s11, %s741_s12  }
  0x34   :  { %s744_s16 = smov [#allocation8]   ;;  %s687_s21 = scalar_lea.hbm %s902_s5, 2048 }
  0x35   :  { %s59_s17 = sshll.u32 %s744_s16, 4  ;;  %p688_p10 = scmp.ne.s32.totalorder %s902_s5, %s687_s21  ;;  %s60_s17 = int_to_ptr.vmem [resolvable:$true] %s59_s17 }
  0x36   :  { %p691_p11 = scmp.lt.u32.totalorder %s687_s21, %s902_s5 }
  0x38   :  { %p693_p12 = pnand %p691_p11, %p688_p10 }
  0x3a   :  { %696 = shalt.err (!%p693_p12)
}
  0x3b   :  { %s697_s1 = scalar_lea.vmem %s60_s17, 2048  ;;  %p702_p0 = scmp.lt.s32.totalorder %s60_s17, %s60_s17 }
  0x3c   :  { %p698_p13 = scmp.ne.s32.totalorder %s60_s17, %s697_s1  ;;  %p703_p1 = scmp.lt.s32.totalorder %s697_s1, %s697_s1 }
  0x3e   :  { %p704_p2 = por %p703_p1, %p702_p0 }
  0x40   :  { %p705_p3 = pnand %p704_p2, %p698_p13 }
  0x42   :  { %708 = shalt.err (!%p705_p3)
}
  0x43   :  { %65 = dma.hbm_to_vmem [thread:$0]  %s902_s5, 2048, %s60_s17, [#allocation9], %s740_s11, %s740_s11, %s741_s12  }
  0x44   :  { %731 = dma.done.wait [#allocation3], 128  }
  0x45   :  { %732 = vsyncadd [#allocation3], 4294967168 }
  0x46   :  { %733 = dma.done.wait [#allocation6], 4096  }
  0x47   :  { %734 = vsyncadd [#allocation6], 4294963200 }
  0x48   :  { %735 = dma.done.wait [#allocation9], 2048  }
  0x49   :  { %736 = vsyncadd [#allocation9], 4294965248  ;;  %v745_v0 = vmov 0.0|0.0   ;;  %vm746_vm0 = vmmov 0   ;;  %v747_v1 = vmov 0.0   ;;  %v81_v2 = vld [vmem:[#allocation5] sm:$0xff] }
  0x4a   :  { %539 = vmatprep.subr.bf16.mxu0 %v745_v0  ;;  %466 = vmatprep.mubr.msk.f32.mxu0 %vm746_vm0, %v747_v1  ;;  %v82_v3 = vld [vmem:[#allocation5 + $0x8] sm:$0xff]  ;;  %v83_v4 = vld [vmem:[#allocation5 + $0x10] sm:$0xff]  ;;  %v84_v6 = vld [vmem:[#allocation5 + $0x18] sm:$0xff]  ;;  %s748_s28 = smov [#allocation10]  }
  0x4b   :  { %563 = vmatprep.subr.bf16.mxu1 %v745_v0  ;;  %501 = vmatprep.mubr.msk.f32.mxu1 %vm746_vm0, %v747_v1  ;;  %v540_v5 = vpack.c.bf16 %v82_v3, %v81_v2  ;;  %v543_v7 = vpack.c.bf16 %v84_v6, %v83_v4  ;;  %v85_v8 = vld [vmem:[#allocation5 + $0x20] sm:$0xff]  ;;  %v86_v9 = vld [vmem:[#allocation5 + $0x28] sm:$0xff]  ;;  %v177_v12 = vld [vmem:[#allocation7 + $0x10] sm:$0xff]  ;;  %s369_s29 = sshll.u32 %s748_s28, 4  ;;  %s370_s29 = int_to_ptr.vmem [resolvable:$true] %s369_s29 }
  0x4c   :  { %v175_v10 = vld [vmem:[#allocation7] sm:$0xff]  ;;  %v176_v11 = vld [vmem:[#allocation7 + $0x8] sm:$0xff]  ;;  %v178_v13 = vld [vmem:[#allocation7 + $0x18] sm:$0xff]  ;;  %v546_v14 = vpack.c.bf16 %v86_v9, %v85_v8  ;;  %s709_s30 = scalar_lea.vmem %s370_s29, 128  ;;  %p714_p5 = scmp.lt.s32.totalorder %s370_s29, %s370_s29 }
  0x4d   :  { %541 = vmatpush3.bf16.msra.mxu0 %v540_v5  ;;  %v564_v15 = vpack.c.bf16 %v176_v11, %v175_v10  ;;  %v87_v16 = vld [vmem:[#allocation5 + $0x30] sm:$0xff]  ;;  %v88_v17 = vld [vmem:[#allocation5 + $0x38] sm:$0xff]  ;;  %v567_v18 = vpack.c.bf16 %v178_v13, %v177_v12  ;;  %v179_v19 = vld [vmem:[#allocation7 + $0x20] sm:$0xff]  ;;  %p710_p4 = scmp.ne.s32.totalorder %s370_s29, %s709_s30  ;;  %p715_p6 = scmp.lt.s32.totalorder %s709_s30, %s709_s30 }
  0x4e   :  { %542 = vmatprep.subr.bf16.mxu0 %v745_v0  ;;  %v180_v20 = vld [vmem:[#allocation7 + $0x28] sm:$0xff]  ;;  %v549_v21 = vpack.c.bf16 %v88_v17, %v87_v16  ;;  %v89_v22 = vld [vmem:[#allocation5 + $0x40] sm:$0xff]  ;;  %v181_v25 = vld [vmem:[#allocation7 + $0x30] sm:$0xff] }
  0x4f   :  { %565 = vmatpush3.bf16.msra.mxu1 %v564_v15  ;;  %v90_v23 = vld [vmem:[#allocation5 + $0x48] sm:$0xff]  ;;  %v570_v24 = vpack.c.bf16 %v180_v20, %v179_v19  ;;  %v182_v26 = vld [vmem:[#allocation7 + $0x38] sm:$0xff]  ;;  %v91_v28 = vld [vmem:[#allocation5 + $0x50] sm:$0xff]  ;;  %p716_p7 = por %p715_p6, %p714_p5 }
  0x50   :  { %566 = vmatprep.subr.bf16.mxu1 %v745_v0  ;;  %v552_v27 = vpack.c.bf16 %v90_v23, %v89_v22  ;;  %v92_v29 = vld [vmem:[#allocation5 + $0x58] sm:$0xff]  ;;  %v573_v30 = vpack.c.bf16 %v182_v26, %v181_v25  ;;  %v183_v31 = vld [vmem:[#allocation7 + $0x40] sm:$0xff]  ;;  %v184_v32 = vld [vmem:[#allocation7 + $0x48] sm:$0xff] }
  0x51   :  { %544 = vmatpush3.bf16.msra.mxu0 %v543_v7  ;;  %v555_v33 = vpack.c.bf16 %v92_v29, %v91_v28  ;;  %v93_v34 = vld [vmem:[#allocation5 + $0x60] sm:$0xff]  ;;  %v94_v35 = vld [vmem:[#allocation5 + $0x68] sm:$0xff]  ;;  %v576_v36 = vpack.c.bf16 %v184_v32, %v183_v31  ;;  %v185_v37 = vld [vmem:[#allocation7 + $0x50] sm:$0xff]  ;;  %p717_p8 = pnand %p716_p7, %p710_p4 }
  0x52   :  { %545 = vmatprep.subr.bf16.mxu0 %v745_v0  ;;  %v186_v38 = vld [vmem:[#allocation7 + $0x58] sm:$0xff]  ;;  %v558_v39 = vpack.c.bf16 %v94_v35, %v93_v34  ;;  %v95_v40 = vld [vmem:[#allocation5 + $0x70] sm:$0xff]  ;;  %v187_v43 = vld [vmem:[#allocation7 + $0x60] sm:$0xff] }
  0x53   :  { %568 = vmatpush3.bf16.msra.mxu1 %v567_v18  ;;  %v96_v41 = vld [vmem:[#allocation5 + $0x78] sm:$0xff]  ;;  %v579_v42 = vpack.c.bf16 %v186_v38, %v185_v37  ;;  %v188_v44 = vld [vmem:[#allocation7 + $0x68] sm:$0xff]  ;;  %v189_v48 = vld [vmem:[#allocation7 + $0x70] sm:$0xff] }
  0x54   :  { %569 = vmatprep.subr.bf16.mxu1 %v745_v0  ;;  %v561_v45 = vpack.c.bf16 %v96_v41, %v95_v40  ;;  %v582_v46 = vpack.c.bf16 %v188_v44, %v187_v43  ;;  %v80_v47 = vld [vmem:[#allocation2] sm:$0xff]  ;;  %v269_v51 = vld [vmem:[#allocation8] sm:$0xff]  ;;  %v270_v52 = vld [vmem:[#allocation8 + $0x8] sm:$0xff] }
  0x55   :  { %547 = vmatpush3.bf16.msra.mxu0 %v546_v14  ;;  %v190_v49 = vld [vmem:[#allocation7 + $0x78] sm:$0xff]  ;;  %v271_v53 = vld [vmem:[#allocation8 + $0x10] sm:$0xff]  ;;  %v588_v54 = vpack.c.bf16 %v270_v52, %v269_v51  ;;  %v273_v57 = vld [vmem:[#allocation8 + $0x20] sm:$0xff] }
  0x56   :  { %548 = vmatprep.subr.bf16.mxu0 %v745_v0  ;;  %v585_v50 = vpack.c.bf16 %v190_v49, %v189_v48  ;;  %v272_v55 = vld [vmem:[#allocation8 + $0x18] sm:$0xff]  ;;  %v274_v58 = vld [vmem:[#allocation8 + $0x28] sm:$0xff]  ;;  %v275_v60 = vld [vmem:[#allocation8 + $0x30] sm:$0xff] }
  0x57   :  { %571 = vmatpush3.bf16.msra.mxu1 %v570_v24  ;;  %v591_v56 = vpack.c.bf16 %v272_v55, %v271_v53  ;;  %v594_v59 = vpack.c.bf16 %v274_v58, %v273_v57  ;;  %v276_v61 = vld [vmem:[#allocation8 + $0x38] sm:$0xff]  ;;  %v277_v63 = vld [vmem:[#allocation8 + $0x40] sm:$0xff]  ;;  %v279_v3 = vld [vmem:[#allocation8 + $0x50] sm:$0xff] }
  0x58   :  { %572 = vmatprep.subr.bf16.mxu1 %v745_v0  ;;  %v597_v62 = vpack.c.bf16 %v276_v61, %v275_v60  ;;  %v280_v4 = vld [vmem:[#allocation8 + $0x58] sm:$0xff]  ;;  %v281_v6 = vld [vmem:[#allocation8 + $0x60] sm:$0xff]  ;;  %v282_v7 = vld [vmem:[#allocation8 + $0x68] sm:$0xff] }
  0x59   :  { %550 = vmatpush3.bf16.msra.mxu0 %v549_v21  ;;  %v603_v5 = vpack.c.bf16 %v280_v4, %v279_v3  ;;  %v606_v8 = vpack.c.bf16 %v282_v7, %v281_v6  ;;  %v380_v9 = vld [vmem:[%s899_s2] ss:$0 sm:$0xff]  ;;  %v283_v14 = vld [vmem:[#allocation8 + $0x70] sm:$0xff] }
  0x5a   :  { %551 = vmatprep.subr.bf16.mxu0 %v745_v0  ;;  %v284_v15 = vld [vmem:[#allocation8 + $0x78] sm:$0xff] }
  0x5b   :  { %574 = vmatpush3.bf16.msra.mxu1 %v573_v30  ;;  %v609_v16 = vpack.c.bf16 %v284_v15, %v283_v14  ;;  %v381_v17 = vld [vmem:[%s901_s4] ss:$0 sm:$0xff] }
  0x5c   :  { %575 = vmatprep.subr.bf16.mxu1 %v745_v0  ;;  %v382_v21 = vld [vmem:[%s903_s6] ss:$0 sm:$0xff] }
  0x5d   :  { %553 = vmatpush3.bf16.msra.mxu0 %v552_v27 }
  0x5e   :  { %554 = vmatprep.subr.bf16.mxu0 %v745_v0 }
  0x5f   :  { %577 = vmatpush3.bf16.msra.mxu1 %v576_v36 }
  0x60   :  { %578 = vmatprep.subr.bf16.mxu1 %v745_v0 }
  0x61   :  { %556 = vmatpush3.bf16.msra.mxu0 %v555_v33 }
  0x62   :  { %557 = vmatprep.subr.bf16.mxu0 %v745_v0 }
  0x63   :  { %580 = vmatpush3.bf16.msra.mxu1 %v579_v42 }
  0x64   :  { %581 = vmatprep.subr.bf16.mxu1 %v745_v0 }
  0x65   :  { %559 = vmatpush3.bf16.msra.mxu0 %v558_v39 }
  0x66   :  { %560 = vmatprep.subr.bf16.mxu0 %v745_v0 }
  0x67   :  { %583 = vmatpush3.bf16.msra.mxu1 %v582_v46 }
  0x68   :  { %584 = vmatprep.subr.bf16.mxu1 %v745_v0 }
  0x69   :  { %562 = vmatpush3.bf16.msra.mxu0 %v561_v45 }
  0x6a   :  { %587 = vmatprep.subr.bf16.mxu0 %v745_v0 }
  0x6b   :  { %586 = vmatpush3.bf16.msra.mxu1 %v585_v50 }
  0x6c   :  { %467 = vmatmul.mubr.f32.vlgmr.msra.gmra.mrb[0].mxu0 %v80_v47 }
  0x6d   :  { %536 = vmatprep.mubr.msk.f32.mxu0 %vm746_vm0, %v747_v1  ;;  %589 = vmatpush3.bf16.msra.mxu0 %v588_v54  ;;  %v278_v1 = vld [vmem:[#allocation8 + $0x48] sm:$0xff] }
  0x6e   :  { %590 = vmatprep.subr.bf16.mxu0 %v745_v0  ;;  %v600_v2 = vpack.c.bf16 %v278_v1, %v277_v63 }
  0x71   :  { %592 = vmatpush3.bf16.msra.mxu0 %v591_v56 }
  0x72   :  { %593 = vmatprep.subr.bf16.mxu0 %v745_v0 }
  0x75   :  { %595 = vmatpush3.bf16.msra.mxu0 %v594_v59 }
  0x76   :  { %596 = vmatprep.subr.bf16.mxu0 %v745_v0 }
  0x79   :  { %598 = vmatpush3.bf16.msra.mxu0 %v597_v62 }
  0x7a   :  { %599 = vmatprep.subr.bf16.mxu0 %v745_v0 }
  0x7d   :  { %601 = vmatpush3.bf16.msra.mxu0 %v600_v2 }
  0x7e   :  { %602 = vmatprep.subr.bf16.mxu0 %v745_v0 }
  0x81   :  { %604 = vmatpush3.bf16.msra.mxu0 %v603_v5 }
  0x82   :  { %605 = vmatprep.subr.bf16.mxu0 %v745_v0 }
  0x85   :  { %607 = vmatpush3.bf16.msra.mxu0 %v606_v8 }
  0x86   :  { %608 = vmatprep.subr.bf16.mxu0 %v745_v0 }
  0x89   :  { %610 = vmatpush3.bf16.msra.mxu0 %v609_v16 }
 0x13f   :  { %v170_v10 = vpop.f32.mrb[0].mxu0 }
 0x140   :  { %v171_v11 = vadd.f32 %v380_v9, %v170_v10  ;;  %v468_v12 = vpop.f32.mrb[1].mxu0 }
 0x142   :  { %v174_v13 = vmax.f32 %v171_v11, 0.0 }
 0x144   :  { %502 = vmatmul.mubr.f32.vlgmr.msra.gmra.mrb[0].mxu1 %v174_v13 }
 0x217   :  { %v264_v18 = vpop.f32.mrb[0].mxu1 }
 0x218   :  { %v265_v19 = vadd.f32 %v381_v17, %v264_v18  ;;  %v503_v0 = vpop.f32.mrb[1].mxu1 }
 0x21a   :  { %v268_v20 = vmax.f32 %v265_v19, 0.0 }
 0x21c   :  { %537 = vmatmul.mubr.f32.vlgmr.msra.gmra.mrb[2].mxu0 %v268_v20 }
 0x2ef   :  { %v358_v22 = vpop.f32.mrb[2].mxu0 }
 0x2f0   :  { %v359_v23 = vadd.f32 %v382_v21, %v358_v22  ;;  %v538_v24 = vpop.f32.mrb[3].mxu0 }
 0x2f2   :  { %362 = vst [vmem:[#allocation10] sm:$0xff] %v359_v23 }
 0x2f3   :  { %720 = shalt.err (!%p717_p8)
}
 0x2f4   :  { %s721_s9 = scalar_lea.hbm %s904_s7, 128 }
 0x2f5   :  { %p722_p9 = scmp.ne.s32.totalorder %s904_s7, %s721_s9  ;;  %p725_p10 = scmp.lt.u32.totalorder %s721_s9, %s904_s7 }
 0x2f7   :  { %p727_p11 = pnand %p725_p10, %p722_p9 }
 0x2f9   :  { %730 = shalt.err (!%p727_p11)
}
 0x2fa   :  { %372 = dma.vmem_to_hbm [thread:$0]  %s370_s29, 128, %s904_s7, [#allocation4]  }
 0x2fb   :  { %737 = dma.done.wait [#allocation4], 128  }
 0x2fc   :  { %738 = vsyncadd [#allocation4], 4294967168 }
 0x2fd   :  { %376 = vsyncpa [#allocation3], 1 }
 0x2fe   :  { %377 = vsyncpa [#allocation6], 1 }
 0x2ff   :  { %378 = vsyncpa [#allocation9], 1 }
 0x300   :  { %379 = vsyncpa [#allocation4], 1 }

</bundles_post_ra>
